<compile_context>
chip_gen: v5e
topology: v5e:2x2
jax: 0.10.0
libtpu: 0.0.40
codegen_flags: <defaults>
</compile_context>

<pallas_src>
import functools
import math

import jax
import jax.numpy as jnp
import numpy as np
from jax import lax
from jax.experimental import pallas as pl
from jax.experimental.pallas import tpu as pltpu


# ---------------------------------------------------------------------------
# Tiling helpers
# ---------------------------------------------------------------------------
def _pick_tile(n, target):
    """Largest divisor of n <= target, preferring multiples of 128, then 8."""
    if n <= target:
        return n
    divs = [t for t in range(1, target + 1) if n % t == 0]
    for pref in (128, 8, 1):
        cand = [t for t in divs if t % pref == 0]
        if cand:
            return max(cand)
    return n


def _pick_head_group(n_heads, d_head, max_width=768):
    """Heads per attention group.  Prefer group widths that are exact
    multiples of 128 lanes, else >=128 lanes, else all heads."""
    if d_head >= max_width:
        return 1
    divs = [h for h in range(1, n_heads + 1) if n_heads % h == 0]
    for h in divs:
        w = h * d_head
        if w % 128 == 0 and w <= max_width:
            return h
    for h in divs:
        w = h * d_head
        if 128 <= w <= max_width:
            return h
    return n_heads


# ---------------------------------------------------------------------------
# Kernel 1: QKV projection, head-group-major output (B, 3G, S, gw).
# grid = (B, S//ts, 3G); each step: (ts, D) @ (D, gw) on the MXU.
# ---------------------------------------------------------------------------
def _qkv_proj_kernel(x_ref, w_ref, b_ref, o_ref):
    # x_ref: (1, ts, D) bf16 ; w_ref: (1, D, gw) bf16 ; b_ref: (1, 1, gw) f32
    y = jnp.dot(x_ref[0], w_ref[0], preferred_element_type=jnp.float32)
    o_ref[0, 0] = (y + b_ref[0]).astype(o_ref.dtype)


# ---------------------------------------------------------------------------
# Kernel 2: flash attention.  grid = (B, G, S//tq), all axes parallel.
# K/V for the full sequence of this (b, group) are resident in VMEM; the kv
# tiles are walked with an in-kernel fori_loop (online softmax, f32 carries).
# ---------------------------------------------------------------------------
def _flash_attn_kernel(q_ref, k_ref, v_ref, o_ref, *,
                       causal, tq, tk, dh, hg, seq):
    qi = pl.program_id(2)
    n_kv = seq // tk

    if causal:
        # kv tiles intersecting [0, qi*tq + tq - 1]  (others never touched)
        n_valid = (qi * tq + tq - 1) // tk + 1
        # kv tiles fully at-or-below the diagonal -> no mask work needed
        n_full = (qi * tq + 1) // tk
    else:
        n_valid = n_kv
        n_full = n_kv

    def head_attention(hs):
        q = q_ref[0, 0, :, hs:hs + dh]                       # (tq, dh) bf16

        def tile_body(masked):
            def body(ki, carry):
                m_prev, l_prev, acc_prev = carry
                start = pl.multiple_of(ki * tk, tk)
                k = k_ref[0, 0, pl.ds(start, tk), hs:hs + dh]    # (tk, dh)
                v = v_ref[0, 0, pl.ds(start, tk), hs:hs + dh]    # (tk, dh)
                # q @ k^T without materializing a transpose.
                s = lax.dot_general(q, k, (((1,), (1,)), ((), ())),
                                    preferred_element_type=jnp.float32)
                if masked:
                    q_pos = qi * tq + lax.broadcasted_iota(jnp.int32, (tq, tk), 0)
                    k_pos = start + lax.broadcasted_iota(jnp.int32, (tq, tk), 1)
                    s = jnp.where(k_pos > q_pos, jnp.float32(-1e30), s)
                m_new = jnp.maximum(m_prev, jnp.max(s, axis=-1, keepdims=True))
                alpha = jnp.exp(m_prev - m_new)                  # (tq, 1)
                p = jnp.exp(s - m_new)                           # (tq, tk) f32
                l_new = alpha * l_prev + jnp.sum(p, axis=-1, keepdims=True)
                acc_new = alpha * acc_prev + jnp.dot(
                    p.astype(v.dtype), v, preferred_element_type=jnp.float32)
                return m_new, l_new, acc_new
            return body

        carry = (jnp.full((tq, 1), -jnp.inf, jnp.float32),   # running max
                 jnp.zeros((tq, 1), jnp.float32),             # running denom
                 jnp.zeros((tq, dh), jnp.float32))            # accumulator
        carry = lax.fori_loop(0, n_full, tile_body(False), carry)
        if causal:
            carry = lax.fori_loop(n_full, n_valid, tile_body(True), carry)
        _, l, acc = carry
        # Every row has at least one valid key (k=0), so l >= 1.
        o_ref[0, 0, :, hs:hs + dh] = (acc / l).astype(o_ref.dtype)

    for j in range(hg):          # static loop over the heads of this group
        head_attention(j * dh)


# ---------------------------------------------------------------------------
# Kernel 3: output projection.  grid = (B, S//ts); one step contracts over
# ALL heads (K = D total, unrolled over G groups of depth gw).
# ---------------------------------------------------------------------------
def _out_proj_kernel(a_ref, w_ref, b_ref, o_ref, *, n_groups):
    ts = a_ref.shape[2]
    d_out = o_ref.shape[2]
    acc = jnp.zeros((ts, d_out), jnp.float32)
    for g in range(n_groups):
        acc = acc + jnp.dot(a_ref[0, g], w_ref[g],
                            preferred_element_type=jnp.float32)
    o_ref[0] = (acc + b_ref[...]).astype(o_ref.dtype)


# ---------------------------------------------------------------------------
# Wrapper
# ---------------------------------------------------------------------------
@functools.partial(jax.jit, static_argnames=("n_heads", "causal_mask"))
def self_attention(x, w_in, b_in, w_out, b_out, n_heads, causal_mask=False):
    """x: (B, S, D) float32.  Returns (B, S, D) float32."""
    B, S, D = x.shape
    H = n_heads
    dh = D // H
    causal = bool(causal_mask)

    hg = _pick_head_group(H, dh)      # heads per group
    G = H // hg                       # number of groups
    gw = hg * dh                      # lane width of one group

    # Tile sizes.
    ts1 = _pick_tile(S, 1024)         # QKV projection sequence tile
    tq = _pick_tile(S, 128)           # attention q tile (v5e-safe)
    tk = _pick_tile(S, 128)           # attention kv tile
    ts3 = _pick_tile(S, 256)          # out-projection sequence tile

    # ---- offline weight reshuffle: group-major, Q pre-scaled by 1/sqrt(dh) --
    scale = 1.0 / math.sqrt(dh)
    w_in_s = w_in.at[:, :D].multiply(scale)
    b_in_s = b_in.at[:D].multiply(scale)
    w_qkv = w_in_s.reshape(D, 3, G, gw).transpose(1, 2, 0, 3)   # (3, G, D, gw)
    w_qkv = w_qkv.reshape(3 * G, D, gw).astype(jnp.bfloat16)
    b_qkv = b_in_s.reshape(3 * G, 1, gw).astype(jnp.float32)
    w_out_g = w_out.reshape(G, gw, D).astype(jnp.bfloat16)      # (G, gw, D)
    b_out2 = b_out.reshape(1, D).astype(jnp.float32)
    x_bf = x.astype(jnp.bfloat16)

    # ---- 1) QKV projection ----
    qkv = pl.pallas_call(
        _qkv_proj_kernel,
        out_shape=jax.ShapeDtypeStruct((B, 3 * G, S, gw), jnp.bfloat16),
        grid_spec=pltpu.PrefetchScalarGridSpec(
            num_scalar_prefetch=0,
            grid=(B, S // ts1, 3 * G),
            in_specs=[
                pl.BlockSpec((1, ts1, D), lambda b, si, c: (b, si, 0)),   # x
                pl.BlockSpec((1, D, gw), lambda b, si, c: (c, 0, 0)),     # W
                pl.BlockSpec((1, 1, gw), lambda b, si, c: (c, 0, 0)),     # b
            ],
            out_specs=pl.BlockSpec((1, 1, ts1, gw),
                                   lambda b, si, c: (b, c, si, 0)),
        ),
        compiler_params=pltpu.CompilerParams(
            dimension_semantics=("parallel", "parallel", "parallel")),
    )(x_bf, w_qkv, b_qkv)

    # ---- 2) flash attention: K/V resident per (batch, group) ----
    attn_kernel = functools.partial(
        _flash_attn_kernel, causal=causal, tq=tq, tk=tk, dh=dh, hg=hg, seq=S)
    attn = pl.pallas_call(
        attn_kernel,
        out_shape=jax.ShapeDtypeStruct((B, G, S, gw), jnp.bfloat16),
        grid_spec=pltpu.PrefetchScalarGridSpec(
            num_scalar_prefetch=0,
            grid=(B, G, S // tq),
            in_specs=[
                pl.BlockSpec((1, 1, tq, gw),
                             lambda b, g, qi: (b, g, qi, 0)),             # Q
                pl.BlockSpec((1, 1, S, gw),
                             lambda b, g, qi: (b, G + g, 0, 0)),          # K
                pl.BlockSpec((1, 1, S, gw),
                             lambda b, g, qi: (b, 2 * G + g, 0, 0)),      # V
            ],
            out_specs=pl.BlockSpec((1, 1, tq, gw),
                                   lambda b, g, qi: (b, g, qi, 0)),
        ),
        compiler_params=pltpu.CompilerParams(
            dimension_semantics=("parallel", "parallel", "parallel"),
            vmem_limit_bytes=32 * 1024 * 1024),
    )(qkv, qkv, qkv)

    # ---- 3) output projection: contract all heads in one grid step ----
    out_kernel = functools.partial(_out_proj_kernel, n_groups=G)
    out = pl.pallas_call(
        out_kernel,
        out_shape=jax.ShapeDtypeStruct((B, S, D), x.dtype),
        grid_spec=pltpu.PrefetchScalarGridSpec(
            num_scalar_prefetch=0,
            grid=(B, S // ts3),
            in_specs=[
                pl.BlockSpec((1, G, ts3, gw), lambda b, si: (b, 0, si, 0)),
                pl.BlockSpec((G, gw, D), lambda b, si: (0, 0, 0)),
                pl.BlockSpec((1, D), lambda b, si: (0, 0)),
            ],
            out_specs=pl.BlockSpec((1, ts3, D), lambda b, si: (b, si, 0)),
        ),
        compiler_params=pltpu.CompilerParams(
            dimension_semantics=("parallel", "parallel")),
    )(attn, w_out_g, b_out2)

    return out


# ---------------------------------------------------------------------------
# Pure-JAX (f32) reference matching the PyTorch forward semantics.
# ---------------------------------------------------------------------------
def self_attention_ref(x, w_in, b_in, w_out, b_out, n_heads, causal_mask=False):
    B, S, D = x.shape
    d_head = D // n_heads
    qkv = jnp.einsum('bsd,de->bse', x, w_in) + b_in
    q, k, v = jnp.split(qkv, 3, axis=-1)

    def to_heads(t):
        return t.reshape(B, S, n_heads, d_head).transpose(0, 2, 1, 3)

    q, k, v = to_heads(q), to_heads(k), to_heads(v)
    w = jnp.einsum('bhqd,bhkd->bhqk', q, k)
    if causal_mask:
        mask = jnp.triu(jnp.ones((S, S), dtype=bool), k=1)
        w = jnp.where(mask[None, None], -jnp.inf, w)
    w = w / math.sqrt(d_head)
    w = jax.nn.softmax(w, axis=-1)
    out = jnp.einsum('bhqk,bhkd->bhqd', w, v)
    out = out.transpose(0, 2, 1, 3).reshape(B, S, D)
    return jnp.einsum('bsd,de->bse', out, w_out) + b_out


if __name__ == "__main__":
    B, S, D = 2, 8, 32
    n_heads = 4

    key = jax.random.PRNGKey(0)
    kx, kw1, kb1, kw2, kb2 = jax.random.split(key, 5)

    x = jax.random.normal(kx, (B, S, D), dtype=jnp.float32)
    bound = 1.0 / math.sqrt(D)
    w_in = jax.random.uniform(kw1, (D, 3 * D), jnp.float32, -bound, bound)
    b_in = jax.random.uniform(kb1, (3 * D,), jnp.float32, -bound, bound)
    w_out = jax.random.uniform(kw2, (D, D), jnp.float32, -bound, bound)
    b_out = jax.random.uniform(kb2, (D,), jnp.float32, -bound, bound)

    ok = True
    for causal in (False, True):
        y = jax.block_until_ready(
            self_attention(x, w_in, b_in, w_out, b_out,
                           n_heads=n_heads, causal_mask=causal))
        y_ref = self_attention_ref(x, w_in, b_in, w_out, b_out, n_heads, causal)
        # bf16 MXU operands / bf16 intermediates -> relaxed tolerance vs f32 ref.
        ok &= bool(np.allclose(np.asarray(y), np.asarray(y_ref),
                               atol=3e-2, rtol=3e-2))

    if ok:
        print("KERNEL_OK")
    else:
        print("KERNEL_MISMATCH")
</pallas_src>

<mosaic_0001>
module attributes {stable_mosaic.version = 11 : i64} {
  func.func @_flash_attn_kernel(%arg0: i32, %arg1: i32, %arg2: i32, %arg3: memref<1x1x8x32xbf16, #tpu.memory_space<vmem>>, %arg4: memref<1x1x8x32xbf16, #tpu.memory_space<vmem>>, %arg5: memref<1x1x8x32xbf16, #tpu.memory_space<vmem>>, %arg6: memref<1x1x8x32xbf16, #tpu.memory_space<vmem>>) attributes {dimension_semantics = [#tpu.dimension_semantics<parallel>, #tpu.dimension_semantics<parallel>, #tpu.dimension_semantics<parallel>], iteration_bounds = array<i64: 2, 1, 1>, scalar_prefetch = 0 : i64, scratch_operands = 0 : i64, tpu.core_type = #tpu.core_type<tc>, window_params = [{transform_indices = @transform_0, window_bounds = array<i64: 1, 1, 8, 32>}, {transform_indices = @transform_1, window_bounds = array<i64: 1, 1, 8, 32>}, {transform_indices = @transform_2, window_bounds = array<i64: 1, 1, 8, 32>}, {transform_indices = @transform_3, window_bounds = array<i64: 1, 1, 8, 32>}]} {
    %c0 = arith.constant 0 : index
    %c0_0 = arith.constant 0 : index
    %c0_1 = arith.constant 0 : index
    %c0_2 = arith.constant 0 : index
    %0 = vector.load %arg3[%c0, %c0_0, %c0_1, %c0_2] : memref<1x1x8x32xbf16, #tpu.memory_space<vmem>>, vector<1x1x8x8xbf16>
    %1 = vector.shape_cast %0 : vector<1x1x8x8xbf16> to vector<8x8xbf16>
    %cst = arith.constant 0xFF800000 : f32
    %2 = vector.broadcast %cst : f32 to vector<8x1xf32>
    %cst_3 = arith.constant 0.000000e+00 : f32
    %3 = vector.broadcast %cst_3 : f32 to vector<8x1xf32>
    %cst_4 = arith.constant 0.000000e+00 : f32
    %4 = vector.broadcast %cst_4 : f32 to vector<8x8xf32>
    %c0_i32 = arith.constant 0 : i32
    %c8_i32 = arith.constant 8 : i32
    %5 = arith.muli %c0_i32, %c8_i32 : i32
    %6 = tpu.assume_multiple %5, 8 : i32
    %c0_5 = arith.constant 0 : index
    %c0_6 = arith.constant 0 : index
    %7 = arith.index_cast %6 : i32 to index
    %c0_7 = arith.constant 0 : index
    %8 = vector.load %arg4[%c0_5, %c0_6, %7, %c0_7] : memref<1x1x8x32xbf16, #tpu.memory_space<vmem>>, vector<1x1x8x8xbf16>
    %9 = vector.shape_cast %8 : vector<1x1x8x8xbf16> to vector<8x8xbf16>
    %c0_8 = arith.constant 0 : index
    %c0_9 = arith.constant 0 : index
    %10 = arith.index_cast %6 : i32 to index
    %c0_10 = arith.constant 0 : index
    %11 = vector.load %arg5[%c0_8, %c0_9, %10, %c0_10] : memref<1x1x8x32xbf16, #tpu.memory_space<vmem>>, vector<1x1x8x8xbf16>
    %12 = vector.shape_cast %11 : vector<1x1x8x8xbf16> to vector<8x8xbf16>
    %cst_11 = arith.constant dense<0.000000e+00> : vector<8x8xf32>
    %13 = tpu.matmul %1, %9, %cst_11 {dimension_numbers = #tpu.dot_dimension_numbers<[1], [1], [0], [0], [0, 0, 1, 0], [], []>} : vector<8x8xbf16>, vector<8x8xbf16>, vector<8x8xf32> -> vector<8x8xf32>
    %cst_12 = arith.constant dense<0xFF800000> : vector<8xf32>
    %14 = vector.multi_reduction <maximumf>, %13, %cst_12 [1] : vector<8x8xf32> to vector<8xf32>
    %15 = vector.shape_cast %14 : vector<8xf32> to vector<8x1xf32>
    %16 = arith.maximumf %2, %15 : vector<8x1xf32>
    %17 = arith.subf %2, %16 : vector<8x1xf32>
    %18 = math.exp %17 : vector<8x1xf32>
    %19 = vector.broadcast %16 : vector<8x1xf32> to vector<8x8xf32>
    %20 = arith.subf %13, %19 : vector<8x8xf32>
    %21 = math.exp %20 : vector<8x8xf32>
    %22 = arith.mulf %18, %3 : vector<8x1xf32>
    %cst_13 = arith.constant dense<0.000000e+00> : vector<8xf32>
    %23 = vector.multi_reduction <add>, %21, %cst_13 [1] : vector<8x8xf32> to vector<8xf32>
    %24 = vector.shape_cast %23 : vector<8xf32> to vector<8x1xf32>
    %25 = arith.addf %22, %24 : vector<8x1xf32>
    %26 = vector.broadcast %18 : vector<8x1xf32> to vector<8x8xf32>
    %27 = arith.mulf %26, %4 : vector<8x8xf32>
    %28 = arith.truncf %21 : vector<8x8xf32> to vector<8x8xbf16>
    %cst_14 = arith.constant dense<0.000000e+00> : vector<8x8xf32>
    %29 = tpu.matmul %28, %12, %cst_14 {dimension_numbers = #tpu.dot_dimension_numbers<[1], [0], [0], [1], [0, 0, 1, 1], [], []>} : vector<8x8xbf16>, vector<8x8xbf16>, vector<8x8xf32> -> vector<8x8xf32>
    %30 = arith.addf %27, %29 : vector<8x8xf32>
    %c1_i32 = arith.constant 1 : i32
    %31 = vector.broadcast %25 : vector<8x1xf32> to vector<8x8xf32>
    %32 = arith.divf %30, %31 : vector<8x8xf32>
    %33 = arith.truncf %32 : vector<8x8xf32> to vector<8x8xbf16>
    %c0_15 = arith.constant 0 : index
    %c0_16 = arith.constant 0 : index
    %c0_17 = arith.constant 0 : index
    %c0_18 = arith.constant 0 : index
    %34 = vector.load %arg6[%c0_15, %c0_16, %c0_17, %c0_18] : memref<1x1x8x32xbf16, #tpu.memory_space<vmem>>, vector<1x1x8x8xbf16>
    %35 = vector.shape_cast %34 : vector<1x1x8x8xbf16> to vector<8x8xbf16>
    %36 = vector.shape_cast %33 : vector<8x8xbf16> to vector<1x1x8x8xbf16>
    tpu.vector_store %arg6[%c0_15, %c0_16, %c0_17, %c0_18], %36 {strides = array<i32>} : memref<1x1x8x32xbf16, #tpu.memory_space<vmem>>, vector<1x1x8x8xbf16>,
    %c0_19 = arith.constant 0 : index
    %c0_20 = arith.constant 0 : index
    %c0_21 = arith.constant 0 : index
    %c8 = arith.constant 8 : index
    %37 = vector.load %arg3[%c0_19, %c0_20, %c0_21, %c8] : memref<1x1x8x32xbf16, #tpu.memory_space<vmem>>, vector<1x1x8x8xbf16>
    %38 = vector.shape_cast %37 : vector<1x1x8x8xbf16> to vector<8x8xbf16>
    %cst_22 = arith.constant 0xFF800000 : f32
    %39 = vector.broadcast %cst_22 : f32 to vector<8x1xf32>
    %cst_23 = arith.constant 0.000000e+00 : f32
    %40 = vector.broadcast %cst_23 : f32 to vector<8x1xf32>
    %cst_24 = arith.constant 0.000000e+00 : f32
    %41 = vector.broadcast %cst_24 : f32 to vector<8x8xf32>
    %c0_i32_25 = arith.constant 0 : i32
    %c8_i32_26 = arith.constant 8 : i32
    %42 = arith.muli %c0_i32_25, %c8_i32_26 : i32
    %43 = tpu.assume_multiple %42, 8 : i32
    %c0_27 = arith.constant 0 : index
    %c0_28 = arith.constant 0 : index
    %44 = arith.index_cast %43 : i32 to index
    %c8_29 = arith.constant 8 : index
    %45 = vector.load %arg4[%c0_27, %c0_28, %44, %c8_29] : memref<1x1x8x32xbf16, #tpu.memory_space<vmem>>, vector<1x1x8x8xbf16>
    %46 = vector.shape_cast %45 : vector<1x1x8x8xbf16> to vector<8x8xbf16>
    %c0_30 = arith.constant 0 : index
    %c0_31 = arith.constant 0 : index
    %47 = arith.index_cast %43 : i32 to index
    %c8_32 = arith.constant 8 : index
    %48 = vector.load %arg5[%c0_30, %c0_31, %47, %c8_32] : memref<1x1x8x32xbf16, #tpu.memory_space<vmem>>, vector<1x1x8x8xbf16>
    %49 = vector.shape_cast %48 : vector<1x1x8x8xbf16> to vector<8x8xbf16>
    %cst_33 = arith.constant dense<0.000000e+00> : vector<8x8xf32>
    %50 = tpu.matmul %38, %46, %cst_33 {dimension_numbers = #tpu.dot_dimension_numbers<[1], [1], [0], [0], [0, 0, 1, 0], [], []>} : vector<8x8xbf16>, vector<8x8xbf16>, vector<8x8xf32> -> vector<8x8xf32>
    %cst_34 = arith.constant dense<0xFF800000> : vector<8xf32>
    %51 = vector.multi_reduction <maximumf>, %50, %cst_34 [1] : vector<8x8xf32> to vector<8xf32>
    %52 = vector.shape_cast %51 : vector<8xf32> to vector<8x1xf32>
    %53 = arith.maximumf %39, %52 : vector<8x1xf32>
    %54 = arith.subf %39, %53 : vector<8x1xf32>
    %55 = math.exp %54 : vector<8x1xf32>
    %56 = vector.broadcast %53 : vector<8x1xf32> to vector<8x8xf32>
    %57 = arith.subf %50, %56 : vector<8x8xf32>
    %58 = math.exp %57 : vector<8x8xf32>
    %59 = arith.mulf %55, %40 : vector<8x1xf32>
    %cst_35 = arith.constant dense<0.000000e+00> : vector<8xf32>
    %60 = vector.multi_reduction <add>, %58, %cst_35 [1] : vector<8x8xf32> to vector<8xf32>
    %61 = vector.shape_cast %60 : vector<8xf32> to vector<8x1xf32>
    %62 = arith.addf %59, %61 : vector<8x1xf32>
    %63 = vector.broadcast %55 : vector<8x1xf32> to vector<8x8xf32>
    %64 = arith.mulf %63, %41 : vector<8x8xf32>
    %65 = arith.truncf %58 : vector<8x8xf32> to vector<8x8xbf16>
    %cst_36 = arith.constant dense<0.000000e+00> : vector<8x8xf32>
    %66 = tpu.matmul %65, %49, %cst_36 {dimension_numbers = #tpu.dot_dimension_numbers<[1], [0], [0], [1], [0, 0, 1, 1], [], []>} : vector<8x8xbf16>, vector<8x8xbf16>, vector<8x8xf32> -> vector<8x8xf32>
    %67 = arith.addf %64, %66 : vector<8x8xf32>
    %c1_i32_37 = arith.constant 1 : i32
    %68 = vector.broadcast %62 : vector<8x1xf32> to vector<8x8xf32>
    %69 = arith.divf %67, %68 : vector<8x8xf32>
    %70 = arith.truncf %69 : vector<8x8xf32> to vector<8x8xbf16>
    %c0_38 = arith.constant 0 : index
    %c0_39 = arith.constant 0 : index
    %c0_40 = arith.constant 0 : index
    %c8_41 = arith.constant 8 : index
    %71 = vector.load %arg6[%c0_38, %c0_39, %c0_40, %c8_41] : memref<1x1x8x32xbf16, #tpu.memory_space<vmem>>, vector<1x1x8x8xbf16>
    %72 = vector.shape_cast %71 : vector<1x1x8x8xbf16> to vector<8x8xbf16>
    %73 = vector.shape_cast %70 : vector<8x8xbf16> to vector<1x1x8x8xbf16>
    tpu.vector_store %arg6[%c0_38, %c0_39, %c0_40, %c8_41], %73 {strides = array<i32>} : memref<1x1x8x32xbf16, #tpu.memory_space<vmem>>, vector<1x1x8x8xbf16>,
    %c0_42 = arith.constant 0 : index
    %c0_43 = arith.constant 0 : index
    %c0_44 = arith.constant 0 : index
    %c16 = arith.constant 16 : index
    %74 = vector.load %arg3[%c0_42, %c0_43, %c0_44, %c16] : memref<1x1x8x32xbf16, #tpu.memory_space<vmem>>, vector<1x1x8x8xbf16>
    %75 = vector.shape_cast %74 : vector<1x1x8x8xbf16> to vector<8x8xbf16>
    %cst_45 = arith.constant 0xFF800000 : f32
    %76 = vector.broadcast %cst_45 : f32 to vector<8x1xf32>
    %cst_46 = arith.constant 0.000000e+00 : f32
    %77 = vector.broadcast %cst_46 : f32 to vector<8x1xf32>
    %cst_47 = arith.constant 0.000000e+00 : f32
    %78 = vector.broadcast %cst_47 : f32 to vector<8x8xf32>
    %c0_i32_48 = arith.constant 0 : i32
    %c8_i32_49 = arith.constant 8 : i32
    %79 = arith.muli %c0_i32_48, %c8_i32_49 : i32
    %80 = tpu.assume_multiple %79, 8 : i32
    %c0_50 = arith.constant 0 : index
    %c0_51 = arith.constant 0 : index
    %81 = arith.index_cast %80 : i32 to index
    %c16_52 = arith.constant 16 : index
    %82 = vector.load %arg4[%c0_50, %c0_51, %81, %c16_52] : memref<1x1x8x32xbf16, #tpu.memory_space<vmem>>, vector<1x1x8x8xbf16>
    %83 = vector.shape_cast %82 : vector<1x1x8x8xbf16> to vector<8x8xbf16>
    %c0_53 = arith.constant 0 : index
    %c0_54 = arith.constant 0 : index
    %84 = arith.index_cast %80 : i32 to index
    %c16_55 = arith.constant 16 : index
    %85 = vector.load %arg5[%c0_53, %c0_54, %84, %c16_55] : memref<1x1x8x32xbf16, #tpu.memory_space<vmem>>, vector<1x1x8x8xbf16>
    %86 = vector.shape_cast %85 : vector<1x1x8x8xbf16> to vector<8x8xbf16>
    %cst_56 = arith.constant dense<0.000000e+00> : vector<8x8xf32>
    %87 = tpu.matmul %75, %83, %cst_56 {dimension_numbers = #tpu.dot_dimension_numbers<[1], [1], [0], [0], [0, 0, 1, 0], [], []>} : vector<8x8xbf16>, vector<8x8xbf16>, vector<8x8xf32> -> vector<8x8xf32>
    %cst_57 = arith.constant dense<0xFF800000> : vector<8xf32>
    %88 = vector.multi_reduction <maximumf>, %87, %cst_57 [1] : vector<8x8xf32> to vector<8xf32>
    %89 = vector.shape_cast %88 : vector<8xf32> to vector<8x1xf32>
    %90 = arith.maximumf %76, %89 : vector<8x1xf32>
    %91 = arith.subf %76, %90 : vector<8x1xf32>
    %92 = math.exp %91 : vector<8x1xf32>
    %93 = vector.broadcast %90 : vector<8x1xf32> to vector<8x8xf32>
    %94 = arith.subf %87, %93 : vector<8x8xf32>
    %95 = math.exp %94 : vector<8x8xf32>
    %96 = arith.mulf %92, %77 : vector<8x1xf32>
    %cst_58 = arith.constant dense<0.000000e+00> : vector<8xf32>
    %97 = vector.multi_reduction <add>, %95, %cst_58 [1] : vector<8x8xf32> to vector<8xf32>
    %98 = vector.shape_cast %97 : vector<8xf32> to vector<8x1xf32>
    %99 = arith.addf %96, %98 : vector<8x1xf32>
    %100 = vector.broadcast %92 : vector<8x1xf32> to vector<8x8xf32>
    %101 = arith.mulf %100, %78 : vector<8x8xf32>
    %102 = arith.truncf %95 : vector<8x8xf32> to vector<8x8xbf16>
    %cst_59 = arith.constant dense<0.000000e+00> : vector<8x8xf32>
    %103 = tpu.matmul %102, %86, %cst_59 {dimension_numbers = #tpu.dot_dimension_numbers<[1], [0], [0], [1], [0, 0, 1, 1], [], []>} : vector<8x8xbf16>, vector<8x8xbf16>, vector<8x8xf32> -> vector<8x8xf32>
    %104 = arith.addf %101, %103 : vector<8x8xf32>
    %c1_i32_60 = arith.constant 1 : i32
    %105 = vector.broadcast %99 : vector<8x1xf32> to vector<8x8xf32>
    %106 = arith.divf %104, %105 : vector<8x8xf32>
    %107 = arith.truncf %106 : vector<8x8xf32> to vector<8x8xbf16>
    %c0_61 = arith.constant 0 : index
    %c0_62 = arith.constant 0 : index
    %c0_63 = arith.constant 0 : index
    %c16_64 = arith.constant 16 : index
    %108 = vector.load %arg6[%c0_61, %c0_62, %c0_63, %c16_64] : memref<1x1x8x32xbf16, #tpu.memory_space<vmem>>, vector<1x1x8x8xbf16>
    %109 = vector.shape_cast %108 : vector<1x1x8x8xbf16> to vector<8x8xbf16>
    %110 = vector.shape_cast %107 : vector<8x8xbf16> to vector<1x1x8x8xbf16>
    tpu.vector_store %arg6[%c0_61, %c0_62, %c0_63, %c16_64], %110 {strides = array<i32>} : memref<1x1x8x32xbf16, #tpu.memory_space<vmem>>, vector<1x1x8x8xbf16>,
    %c0_65 = arith.constant 0 : index
    %c0_66 = arith.constant 0 : index
    %c0_67 = arith.constant 0 : index
    %c24 = arith.constant 24 : index
    %111 = vector.load %arg3[%c0_65, %c0_66, %c0_67, %c24] : memref<1x1x8x32xbf16, #tpu.memory_space<vmem>>, vector<1x1x8x8xbf16>
    %112 = vector.shape_cast %111 : vector<1x1x8x8xbf16> to vector<8x8xbf16>
    %cst_68 = arith.constant 0xFF800000 : f32
    %113 = vector.broadcast %cst_68 : f32 to vector<8x1xf32>
    %cst_69 = arith.constant 0.000000e+00 : f32
    %114 = vector.broadcast %cst_69 : f32 to vector<8x1xf32>
    %cst_70 = arith.constant 0.000000e+00 : f32
    %115 = vector.broadcast %cst_70 : f32 to vector<8x8xf32>
    %c0_i32_71 = arith.constant 0 : i32
    %c8_i32_72 = arith.constant 8 : i32
    %116 = arith.muli %c0_i32_71, %c8_i32_72 : i32
    %117 = tpu.assume_multiple %116, 8 : i32
    %c0_73 = arith.constant 0 : index
    %c0_74 = arith.constant 0 : index
    %118 = arith.index_cast %117 : i32 to index
    %c24_75 = arith.constant 24 : index
    %119 = vector.load %arg4[%c0_73, %c0_74, %118, %c24_75] : memref<1x1x8x32xbf16, #tpu.memory_space<vmem>>, vector<1x1x8x8xbf16>
    %120 = vector.shape_cast %119 : vector<1x1x8x8xbf16> to vector<8x8xbf16>
    %c0_76 = arith.constant 0 : index
    %c0_77 = arith.constant 0 : index
    %121 = arith.index_cast %117 : i32 to index
    %c24_78 = arith.constant 24 : index
    %122 = vector.load %arg5[%c0_76, %c0_77, %121, %c24_78] : memref<1x1x8x32xbf16, #tpu.memory_space<vmem>>, vector<1x1x8x8xbf16>
    %123 = vector.shape_cast %122 : vector<1x1x8x8xbf16> to vector<8x8xbf16>
    %cst_79 = arith.constant dense<0.000000e+00> : vector<8x8xf32>
    %124 = tpu.matmul %112, %120, %cst_79 {dimension_numbers = #tpu.dot_dimension_numbers<[1], [1], [0], [0], [0, 0, 1, 0], [], []>} : vector<8x8xbf16>, vector<8x8xbf16>, vector<8x8xf32> -> vector<8x8xf32>
    %cst_80 = arith.constant dense<0xFF800000> : vector<8xf32>
    %125 = vector.multi_reduction <maximumf>, %124, %cst_80 [1] : vector<8x8xf32> to vector<8xf32>
    %126 = vector.shape_cast %125 : vector<8xf32> to vector<8x1xf32>
    %127 = arith.maximumf %113, %126 : vector<8x1xf32>
    %128 = arith.subf %113, %127 : vector<8x1xf32>
    %129 = math.exp %128 : vector<8x1xf32>
    %130 = vector.broadcast %127 : vector<8x1xf32> to vector<8x8xf32>
    %131 = arith.subf %124, %130 : vector<8x8xf32>
    %132 = math.exp %131 : vector<8x8xf32>
    %133 = arith.mulf %129, %114 : vector<8x1xf32>
    %cst_81 = arith.constant dense<0.000000e+00> : vector<8xf32>
    %134 = vector.multi_reduction <add>, %132, %cst_81 [1] : vector<8x8xf32> to vector<8xf32>
    %135 = vector.shape_cast %134 : vector<8xf32> to vector<8x1xf32>
    %136 = arith.addf %133, %135 : vector<8x1xf32>
    %137 = vector.broadcast %129 : vector<8x1xf32> to vector<8x8xf32>
    %138 = arith.mulf %137, %115 : vector<8x8xf32>
    %139 = arith.truncf %132 : vector<8x8xf32> to vector<8x8xbf16>
    %cst_82 = arith.constant dense<0.000000e+00> : vector<8x8xf32>
    %140 = tpu.matmul %139, %123, %cst_82 {dimension_numbers = #tpu.dot_dimension_numbers<[1], [0], [0], [1], [0, 0, 1, 1], [], []>} : vector<8x8xbf16>, vector<8x8xbf16>, vector<8x8xf32> -> vector<8x8xf32>
    %141 = arith.addf %138, %140 : vector<8x8xf32>
    %c1_i32_83 = arith.constant 1 : i32
    %142 = vector.broadcast %136 : vector<8x1xf32> to vector<8x8xf32>
    %143 = arith.divf %141, %142 : vector<8x8xf32>
    %144 = arith.truncf %143 : vector<8x8xf32> to vector<8x8xbf16>
    %c0_84 = arith.constant 0 : index
    %c0_85 = arith.constant 0 : index
    %c0_86 = arith.constant 0 : index
    %c24_87 = arith.constant 24 : index
    %145 = vector.load %arg6[%c0_84, %c0_85, %c0_86, %c24_87] : memref<1x1x8x32xbf16, #tpu.memory_space<vmem>>, vector<1x1x8x8xbf16>
    %146 = vector.shape_cast %145 : vector<1x1x8x8xbf16> to vector<8x8xbf16>
    %147 = vector.shape_cast %144 : vector<8x8xbf16> to vector<1x1x8x8xbf16>
    tpu.vector_store %arg6[%c0_84, %c0_85, %c0_86, %c24_87], %147 {strides = array<i32>} : memref<1x1x8x32xbf16, #tpu.memory_space<vmem>>, vector<1x1x8x8xbf16>,
    return
  }
  func.func @transform_0(%arg0: i32, %arg1: i32, %arg2: i32) -> (i32, i32, i32, i32) {
    %c0_i32 = arith.constant 0 : i32
    %c0_i32_0 = arith.constant 0 : i32
    return %arg0, %arg1, %arg2, %c0_i32 : i32, i32, i32, i32
  }
  func.func @transform_1(%arg0: i32, %arg1: i32, %arg2: i32) -> (i32, i32, i32, i32) {
    %c1_i32 = arith.constant 1 : i32
    %0 = arith.addi %c1_i32, %arg1 : i32
    %c0_i32 = arith.constant 0 : i32
    %c0_i32_0 = arith.constant 0 : i32
    %c0_i32_1 = arith.constant 0 : i32
    return %arg0, %0, %c0_i32, %c0_i32_0 : i32, i32, i32, i32
  }
  func.func @transform_2(%arg0: i32, %arg1: i32, %arg2: i32) -> (i32, i32, i32, i32) {
    %c2_i32 = arith.constant 2 : i32
    %0 = arith.addi %c2_i32, %arg1 : i32
    %c0_i32 = arith.constant 0 : i32
    %c0_i32_0 = arith.constant 0 : i32
    %c0_i32_1 = arith.constant 0 : i32
    return %arg0, %0, %c0_i32, %c0_i32_0 : i32, i32, i32, i32
  }
  func.func @transform_3(%arg0: i32, %arg1: i32, %arg2: i32) -> (i32, i32, i32, i32) {
    %c0_i32 = arith.constant 0 : i32
    %c0_i32_0 = arith.constant 0 : i32
    return %arg0, %arg1, %arg2, %c0_i32 : i32, i32, i32, i32
  }
}

module attributes {stable_mosaic.version = 11 : i64} {
  func.func @_qkv_proj_kernel(%arg0: i32, %arg1: i32, %arg2: i32, %arg3: memref<1x8x32xbf16, #tpu.memory_space<vmem>>, %arg4: memref<1x32x32xbf16, #tpu.memory_space<vmem>>, %arg5: memref<1x1x32xf32, #tpu.memory_space<vmem>>, %arg6: memref<1x1x8x32xbf16, #tpu.memory_space<vmem>>) attributes {dimension_semantics = [#tpu.dimension_semantics<parallel>, #tpu.dimension_semantics<parallel>, #tpu.dimension_semantics<parallel>], iteration_bounds = array<i64: 2, 1, 3>, scalar_prefetch = 0 : i64, scratch_operands = 0 : i64, tpu.core_type = #tpu.core_type<tc>, window_params = [{transform_indices = @transform_0, window_bounds = array<i64: 1, 8, 32>}, {transform_indices = @transform_1, window_bounds = array<i64: 1, 32, 32>}, {transform_indices = @transform_2, window_bounds = array<i64: 1, 1, 32>}, {transform_indices = @transform_3, window_bounds = array<i64: 1, 1, 8, 32>}]} {
    %c0 = arith.constant 0 : index
    %c0_0 = arith.constant 0 : index
    %c0_1 = arith.constant 0 : index
    %0 = vector.load %arg3[%c0, %c0_0, %c0_1] : memref<1x8x32xbf16, #tpu.memory_space<vmem>>, vector<1x8x32xbf16>
    %1 = vector.shape_cast %0 : vector<1x8x32xbf16> to vector<8x32xbf16>
    %c0_2 = arith.constant 0 : index
    %c0_3 = arith.constant 0 : index
    %c0_4 = arith.constant 0 : index
    %2 = vector.load %arg4[%c0_2, %c0_3, %c0_4] : memref<1x32x32xbf16, #tpu.memory_space<vmem>>, vector<1x32x32xbf16>
    %3 = vector.shape_cast %2 : vector<1x32x32xbf16> to vector<32x32xbf16>
    %cst = arith.constant dense<0.000000e+00> : vector<8x32xf32>
    %4 = tpu.matmul %1, %3, %cst {dimension_numbers = #tpu.dot_dimension_numbers<[1], [0], [0], [1], [0, 0, 1, 1], [], []>} : vector<8x32xbf16>, vector<32x32xbf16>, vector<8x32xf32> -> vector<8x32xf32>
    %c0_5 = arith.constant 0 : index
    %c0_6 = arith.constant 0 : index
    %c0_7 = arith.constant 0 : index
    %5 = vector.load %arg5[%c0_5, %c0_6, %c0_7] : memref<1x1x32xf32, #tpu.memory_space<vmem>>, vector<1x1x32xf32>
    %6 = vector.shape_cast %5 : vector<1x1x32xf32> to vector<1x32xf32>
    %7 = vector.broadcast %6 : vector<1x32xf32> to vector<8x32xf32>
    %8 = arith.addf %4, %7 : vector<8x32xf32>
    %9 = arith.truncf %8 : vector<8x32xf32> to vector<8x32xbf16>
    %c0_8 = arith.constant 0 : index
    %c0_9 = arith.constant 0 : index
    %c0_10 = arith.constant 0 : index
    %c0_11 = arith.constant 0 : index
    %10 = vector.load %arg6[%c0_8, %c0_9, %c0_10, %c0_11] : memref<1x1x8x32xbf16, #tpu.memory_space<vmem>>, vector<1x1x8x32xbf16>
    %11 = vector.shape_cast %10 : vector<1x1x8x32xbf16> to vector<8x32xbf16>
    %12 = vector.shape_cast %9 : vector<8x32xbf16> to vector<1x1x8x32xbf16>
    tpu.vector_store %arg6[%c0_8, %c0_9, %c0_10, %c0_11], %12 {strides = array<i32>} : memref<1x1x8x32xbf16, #tpu.memory_space<vmem>>, vector<1x1x8x32xbf16>,
    return
  }
  func.func @transform_0(%arg0: i32, %arg1: i32, %arg2: i32) -> (i32, i32, i32) {
    %c0_i32 = arith.constant 0 : i32
    %c0_i32_0 = arith.constant 0 : i32
    return %arg0, %arg1, %c0_i32 : i32, i32, i32
  }
  func.func @transform_1(%arg0: i32, %arg1: i32, %arg2: i32) -> (i32, i32, i32) {
    %c0_i32 = arith.constant 0 : i32
    %c0_i32_0 = arith.constant 0 : i32
    %c0_i32_1 = arith.constant 0 : i32
    return %arg2, %c0_i32, %c0_i32_0 : i32, i32, i32
  }
  func.func @transform_2(%arg0: i32, %arg1: i32, %arg2: i32) -> (i32, i32, i32) {
    %c0_i32 = arith.constant 0 : i32
    %c0_i32_0 = arith.constant 0 : i32
    %c0_i32_1 = arith.constant 0 : i32
    return %arg2, %c0_i32, %c0_i32_0 : i32, i32, i32
  }
  func.func @transform_3(%arg0: i32, %arg1: i32, %arg2: i32) -> (i32, i32, i32, i32) {
    %c0_i32 = arith.constant 0 : i32
    %c0_i32_0 = arith.constant 0 : i32
    return %arg0, %arg2, %arg1, %c0_i32 : i32, i32, i32, i32
  }
}

module attributes {stable_mosaic.version = 11 : i64} {
  func.func @_out_proj_kernel(%arg0: i32, %arg1: i32, %arg2: memref<1x1x8x32xbf16, #tpu.memory_space<vmem>>, %arg3: memref<1x32x32xbf16, #tpu.memory_space<vmem>>, %arg4: memref<1x32xf32, #tpu.memory_space<vmem>>, %arg5: memref<1x8x32xf32, #tpu.memory_space<vmem>>) attributes {dimension_semantics = [#tpu.dimension_semantics<parallel>, #tpu.dimension_semantics<parallel>], iteration_bounds = array<i64: 2, 1>, scalar_prefetch = 0 : i64, scratch_operands = 0 : i64, tpu.core_type = #tpu.core_type<tc>, window_params = [{transform_indices = @transform_0, window_bounds = array<i64: 1, 1, 8, 32>}, {pipeline_mode = #tpu.pipeline_mode<synchronous>, transform_indices = @transform_1, window_bounds = array<i64: 1, 32, 32>}, {pipeline_mode = #tpu.pipeline_mode<synchronous>, transform_indices = @transform_2, window_bounds = array<i64: 1, 32>}, {transform_indices = @transform_3, window_bounds = array<i64: 1, 8, 32>}]} {
    %cst = arith.constant 0.000000e+00 : f32
    %0 = vector.broadcast %cst : f32 to vector<8x32xf32>
    %c0 = arith.constant 0 : index
    %c0_0 = arith.constant 0 : index
    %c0_1 = arith.constant 0 : index
    %c0_2 = arith.constant 0 : index
    %1 = vector.load %arg2[%c0, %c0_0, %c0_1, %c0_2] : memref<1x1x8x32xbf16, #tpu.memory_space<vmem>>, vector<1x1x8x32xbf16>
    %2 = vector.shape_cast %1 : vector<1x1x8x32xbf16> to vector<8x32xbf16>
    %c0_3 = arith.constant 0 : index
    %c0_4 = arith.constant 0 : index
    %c0_5 = arith.constant 0 : index
    %3 = vector.load %arg3[%c0_3, %c0_4, %c0_5] : memref<1x32x32xbf16, #tpu.memory_space<vmem>>, vector<1x32x32xbf16>
    %4 = vector.shape_cast %3 : vector<1x32x32xbf16> to vector<32x32xbf16>
    %cst_6 = arith.constant dense<0.000000e+00> : vector<8x32xf32>
    %5 = tpu.matmul %2, %4, %cst_6 {dimension_numbers = #tpu.dot_dimension_numbers<[1], [0], [0], [1], [0, 0, 1, 1], [], []>} : vector<8x32xbf16>, vector<32x32xbf16>, vector<8x32xf32> -> vector<8x32xf32>
    %6 = arith.addf %0, %5 : vector<8x32xf32>
    %c0_7 = arith.constant 0 : index
    %c0_8 = arith.constant 0 : index
    %7 = vector.load %arg4[%c0_7, %c0_8] : memref<1x32xf32, #tpu.memory_space<vmem>>, vector<1x32xf32>
    %8 = vector.broadcast %7 : vector<1x32xf32> to vector<8x32xf32>
    %9 = arith.addf %6, %8 : vector<8x32xf32>
    %c0_9 = arith.constant 0 : index
    %c0_10 = arith.constant 0 : index
    %c0_11 = arith.constant 0 : index
    %10 = vector.load %arg5[%c0_9, %c0_10, %c0_11] : memref<1x8x32xf32, #tpu.memory_space<vmem>>, vector<1x8x32xf32>
    %11 = vector.shape_cast %10 : vector<1x8x32xf32> to vector<8x32xf32>
    %12 = vector.shape_cast %9 : vector<8x32xf32> to vector<1x8x32xf32>
    tpu.vector_store %arg5[%c0_9, %c0_10, %c0_11], %12 {strides = array<i32>} : memref<1x8x32xf32, #tpu.memory_space<vmem>>, vector<1x8x32xf32>,
    return
  }
  func.func @transform_0(%arg0: i32, %arg1: i32) -> (i32, i32, i32, i32) {
    %c0_i32 = arith.constant 0 : i32
    %c0_i32_0 = arith.constant 0 : i32
    %c0_i32_1 = arith.constant 0 : i32
    return %arg0, %c0_i32, %arg1, %c0_i32_0 : i32, i32, i32, i32
  }
  func.func @transform_1(%arg0: i32, %arg1: i32) -> (i32, i32, i32) {
    %c0_i32 = arith.constant 0 : i32
    %c0_i32_0 = arith.constant 0 : i32
    %c0_i32_1 = arith.constant 0 : i32
    %c0_i32_2 = arith.constant 0 : i32
    return %c0_i32, %c0_i32_0, %c0_i32_1 : i32, i32, i32
  }
  func.func @transform_2(%arg0: i32, %arg1: i32) -> (i32, i32) {
    %c0_i32 = arith.constant 0 : i32
    %c0_i32_0 = arith.constant 0 : i32
    %c0_i32_1 = arith.constant 0 : i32
    return %c0_i32, %c0_i32_0 : i32, i32
  }
  func.func @transform_3(%arg0: i32, %arg1: i32) -> (i32, i32, i32) {
    %c0_i32 = arith.constant 0 : i32
    %c0_i32_0 = arith.constant 0 : i32
    return %arg0, %arg1, %c0_i32 : i32, i32, i32
  }
}

</mosaic_0001>

<bundles_post_ra>
// kernel: self_attention.4
= control target key start
LH: loop header
LB: loop body
LE: loop exit
PB: predicated region body
PF: predicated region fallthrough
CT: control target
= control target key end

     0   :  { %s921_s12 = smov 0   ;;  %s923_s13 = smov 0   ;;  %s1034_s0 = inlined_call_operand.vmem [shape: bf16[2,3,8,32], index: 0, kind: input, shape index: {}, may-alias: {0,1,2}]   ;;  %s1035_s1 = inlined_call_operand.vmem [shape: bf16[2,3,8,32], index: 1, kind: input, shape index: {}, may-alias: {0,1,2}]   ;;  %s1036_s2 = inlined_call_operand.vmem [shape: bf16[2,3,8,32], index: 2, kind: input, shape index: {}, may-alias: {0,1,2}]   ;;  %s1037_s3 = inlined_call_operand.vmem [shape: bf16[2,1,8,32], index: 3, kind: output, shape index: {}]  }
   0x1   :  { %s925_s14 = smov 0  }
   0x2 LB: > { %s32_s15 = sadd.s32 1, %s889_s13  ;;  %p795_p0 = scmp.ge.s32.totalorder %s893_s14, 1  ;;  %s893_s14 = sphi %s925_s14, %s13_s14   ;;  %s889_s13 = sphi %s923_s13, %s1039_s13   ;;  %s885_s12 = sphi %s921_s12, %s1038_s12  }
   0x3   : > { %p34_p1 = scmp.ge.s32.totalorder %s32_s15, 2  ;;  %p208_p2 = scmp.lt.s32.totalorder %s893_s14, 3 }
   0x5   : > { %s1041_s15 = smov (%p34_p1, %s32_s15), 0  ;;  %p209_p3 = pnand %p795_p0, %p208_p2 }
   0x6   : > { %p261_p4 = scmp.lt.s32.totalorder (!%p209_p3), %s885_s12, 1  ;;  %s895_s24 = smov (!%p209_p3), 120  }
   0x7   : > { %212 = sbr.rel (%p209_p3) target bundleno = 829 (0x33d), region = 32  ;;  %s896_s25 = smov (!%p209_p3), 104  }
   0x8   : > { %s897_s26 = smov (!%p209_p3), 112   ;;  %s898_s8 = smov (!%p209_p3), 8  }
   0x9   : > { %s899_s9 = smov (!%p209_p3), 24   ;;  %s900_s10 = smov (!%p209_p3), 16  }
   0xc   : > { %s1043_s12 = smov (!%p261_p4, %s885_s12), 1  ;;  %vm306_vm0 = vcmask 64512   ;;  %vm344_vm1 = vcmask 1043456   ;;  %vm378_vm6 = vcmask 60416  }
   0xd   : > { %s942_s16 = smul.u32 12, %s1043_s12  ;;  %s799_s4 = sshll.u32 %s1043_s12, 2 }
   0xe   : > { %s1008_s7 = scalar_lea.vmem %s1037_s3, %s799_s4 }
   0xf   : > { %s811_s17 = sadd.s32 4, %s942_s16  ;;  %s271_s20 = scalar_lea.vmem %s1034_s0, %s942_s16 }
  0x10   : > { %s952_s23 = scalar_lea.vmem %s1035_s1, %s811_s17  ;;  %v380_v0 = vld [vmem:[%s271_s20] sm:$0xf]  ;;  %s813_s27 = sadd.s32 8, %s942_s16 }
  0x11   : > { %v304_v1 = vld [vmem:[%s952_s23] sm:$0xf]  ;;  %v384_v2 = vunpack.c.l.b16 %v380_v0  ;;  %s973_s30 = scalar_lea.vmem %s1036_s2, %s813_s27 }
  0x12   : > { %v569_v3 = vld [vmem:[%s952_s23] sm:$0xf]  ;;  %v311_v4 = vsel %vm306_vm0, %v304_v1, 0 }
  0x13   : > { %v475_v5 = vld [vmem:[%s952_s23] sm:$0xf]  ;;  %v577_v6 = vunpack.c.l.b16 %v569_v3  ;;  %320 = vmatpush.bf16.xpose.msra.mxu0 %v311_v4  ;;  %v385_v7 = vpack.c.b16 %v384_v2, %v384_v2 }
  0x14   : > { %v483_v9 = vunpack.c.l.b16 %v475_v5  ;;  %v303_v10 = vld [vmem:[%s271_s20] sm:$0xf] }
  0x15   : > { %v578_v8 = vpack.c.b16 %v577_v6, %v577_v6  ;;  %386 = vrot.lane.b32.xlu1 %v385_v7, %s895_s24  ;;  %v568_v12 = vld [vmem:[%s271_s20] sm:$0xf] }
  0x16   : > { %v484_v11 = vpack.c.b16 %v483_v9, %v483_v9  ;;  %v572_v13 = vunpack.c.l.b16 %v568_v12  ;;  %v474_v15 = vld [vmem:[%s271_s20] sm:$0xf] }
  0x17   : > { %579 = vrot.lane.b32.xlu2 %v578_v8, %s896_s25  ;;  %v478_v18 = vunpack.c.l.b16 %v474_v15  ;;  %v381_v26 = vld [vmem:[%s952_s23] sm:$0xf] }
  0x18   : > { %v573_v14 = vpack.c.b16 %v572_v13, %v572_v13  ;;  %v389_v27 = vunpack.c.l.b16 %v381_v26  ;;  %v305_v29 = vld [vmem:[%s973_s30] sm:$0xf] }
  0x19   : > { %v479_v20 = vpack.c.b16 %v478_v18, %v478_v18  ;;  %v346_v30 = vsel %vm344_vm1, %v305_v29, 0  ;;  %v382_v32 = vld [vmem:[%s973_s30] sm:$0xf] }
  0x1a   : > { %800 = vmatmul.msk.bf16.vlgmr.msra.gmra.mxu0 %vm306_vm0, %v303_v10  ;;  %v390_v28 = vpack.c.b16 %v389_v27, %v389_v27  ;;  %355 = vmatpush.bf16.msra.mxu1 %v346_v30  ;;  %v428_v34 = vunpack.c.l.b16 %v382_v32  ;;  %v570_v59 = vld [vmem:[%s973_s30] sm:$0xf] }
  0x1b   : > { %v616_v60 = vunpack.c.l.b16 %v570_v59  ;;  %v476_v62 = vld [vmem:[%s973_s30] sm:$0xf] }
  0x1c   : > { %v429_v36 = vpack.c.b16 %v428_v34, %v428_v34  ;;  %v522_v63 = vunpack.c.l.b16 %v476_v62 }
  0x1d   : > { %485 = vrot.lane.b32.xlu1 %v484_v11, %s897_s26  ;;  %v617_v61 = vpack.c.b16 %v616_v60, %v616_v60 }
  0x1e   : > { %v523_v0 = vpack.c.b16 %v522_v63, %v522_v63 }
  0x1f   : > { %480 = vrot.lane.b32.xlu2 %v479_v20, %s897_s26 }
  0x25   : > { %574 = vrot.lane.b32.xlu1 %v573_v14, %s896_s25 }
  0x2d   : > { %430 = vrot.lane.b32.xlu1 %v429_v36, %s895_s24 }
  0x71   : > { %v580_v17 = vpop.permute.xlu2 %579 }
  0x72   : > { %v585_v19 = vsel %vm306_vm0, %v580_v17, 0 }
  0x73   : > { %594 = vmatpush.bf16.xpose.msrb.mxu0 %v585_v19 }
  0x79   : > { %v481_v44 = vpop.permute.xlu2 %480 }
  0x87   : > { %v387_v16 = vpop.permute.xlu1 %386 }
  0x8f   : > { %v486_v21 = vpop.permute.xlu1 %485 }
  0x90   : > { %v491_v31 = vsel %vm306_vm0, %v486_v21, 0 }
  0x91   : > { %500 = vmatpush.bf16.xpose.msrb.mxu1 %v491_v31 }
  0x97   : > { %v322_v22 = vpop.f32.mrf.mxu0  ;;  %v575_v24 = vpop.permute.xlu1 %574 }
  0x98   : > { %v326_v23 = vsel %vm306_vm0, %v322_v22, -inf  ;;  %806 = vmatmul.msk.bf16.vlgmr.msrb.gmra.mxu0 %vm306_vm0, %v575_v24 }
  0x99   : > { %327 = vmax.xlane.f32.xlu0 %v326_v23 }
  0x9f   : > { %v324_v25 = vpop.f32.mrf.mxu0  ;;  %v431_v2 = vpop.permute.xlu1 %430 }
  0xa0   : > { %v436_v3 = vsel %vm344_vm1, %v431_v2, 0 }
  0xa1   : > { %445 = vmatpush.bf16.msra.mxu3 %v436_v3 }
  0xad   : > { %391 = vrot.lane.b32.xlu0 %v390_v28, %s895_s24 }
 0x10c   : > { %v328_v33 = vpop.xlane.xlu0 %327 }
 0x10d   : > { %v332_v35 = vsub.f32 %v322_v22, %v328_v33  ;;  %v329_v46 = vsub.f32 -inf, %v328_v33 }
 0x10f   : > { %v333_v37 = vmul.f32 1.442695, %v332_v35  ;;  %v330_v47 = vmul.f32 1.442695, %v329_v46 }
 0x111   : > { %847 = vpow2.f32 %v333_v37 }
 0x112   : > { %849 = vpow2.f32 %v330_v47 }
 0x115   : > { %v596_v40 = vpop.f32.mrf.mxu0 }
 0x116   : > { %v600_v45 = vsel %vm306_vm0, %v596_v40, -inf }
 0x117   : > { %v848_v38 = vpop.eup %847  ;;  %601 = vmax.xlane.f32.xlu1 %v600_v45 }
 0x118   : > { %v340_v39 = vpack.c.bf16 %v848_v38, %v848_v38  ;;  %v850_v48 = vpop.eup %849  ;;  %v336_v1 = vsel %vm306_vm0, %v848_v38, 0.0 }
 0x119   : > { %v335_v49 = vmul.f32 0.0, %v850_v48 }
 0x11a   : > { %801 = vmatmul.msk.bf16.vlgmr.msra.gmra.mxu1 %vm306_vm0, %v340_v39 }
 0x11d   : > { %v598_v43 = vpop.f32.mrf.mxu0 }
 0x11f   : > { %v392_v41 = vpop.permute.xlu0 %391 }
 0x120   : > { %v397_v42 = vsel %vm306_vm0, %v392_v41, 0 }
 0x121   : > { %406 = vmatpush.bf16.xpose.msra.mxu2 %v397_v42 }
 0x128   : > { %802 = vmatmul.msk.bf16.vlgmr.msra.gmra.mxu2 %vm306_vm0, %v387_v16 }
 0x12a   : > { %804 = vmatmul.msk.bf16.vlgmr.msrb.gmra.mxu1 %vm306_vm0, %v481_v44 }
 0x18a   : > { %v602_v6 = vpop.xlane.xlu1 %601 }
 0x18b   : > { %v606_v10 = vsub.f32 %v596_v40, %v602_v6  ;;  %v603_v44 = vsub.f32 -inf, %v602_v6 }
 0x18d   : > { %v607_v12 = vmul.f32 1.442695, %v606_v10  ;;  %v604_v45 = vmul.f32 1.442695, %v603_v44 }
 0x197   : > { %v357_v50 = vpop.f32.mrf.mxu1 }
 0x198   : > { %v985_v51 = vadd.f32 %v357_v50, %v335_v49 }
 0x19f   : > { %v359_v52 = vpop.f32.mrf.mxu1 }
 0x1a7   : > { %v502_v53 = vpop.f32.mrf.mxu1 }
 0x1a8   : > { %v506_v54 = vsel %vm306_vm0, %v502_v53, -inf }
 0x1a9   : > { %507 = vmax.xlane.f32.xlu0 %v506_v54 }
 0x1ab   : > { %v408_v55 = vpop.f32.mrf.mxu2 }
 0x1ac   : > { %v412_v56 = vsel %vm306_vm0, %v408_v55, -inf }
 0x1ad   : > { %413 = vmax.xlane.f32.xlu2 %v412_v56 }
 0x1af   : > { %v504_v57 = vpop.f32.mrf.mxu1 }
 0x1b3   : > { %v410_v58 = vpop.f32.mrf.mxu2 }
 0x1bd   : > { %618 = vrot.lane.b32.xlu0 %v617_v61, %s896_s25 }
 0x1c5   : > { %524 = vrot.lane.b32.xlu2 %v523_v0, %s897_s26 }
 0x1e7   : > { %337 = vadd.xlane.f32.xlu0 %v336_v1 }
 0x21c   : > { %v508_v4 = vpop.xlane.xlu0 %507 }
 0x21d   : > { %v512_v5 = vsub.f32 %v502_v53, %v508_v4  ;;  %v509_v41 = vsub.f32 -inf, %v508_v4 }
 0x21f   : > { %v513_v7 = vmul.f32 1.442695, %v512_v5  ;;  %v510_v43 = vmul.f32 1.442695, %v509_v41 }
 0x220   : > { %v414_v8 = vpop.xlane.xlu2 %413 }
 0x221   : > { %v418_v9 = vsub.f32 %v408_v55, %v414_v8  ;;  %851 = vpow2.f32 %v513_v7  ;;  %v415_v40 = vsub.f32 -inf, %v414_v8 }
 0x223   : > { %v419_v11 = vmul.f32 1.442695, %v418_v9  ;;  %v416_v42 = vmul.f32 1.442695, %v415_v40 }
 0x225   : > { %853 = vpow2.f32 %v419_v11 }
 0x226   : > { %855 = vpow2.f32 %v607_v12 }
 0x227   : > { %v852_v14 = vpop.eup %851 }
 0x228   : > { %v525_v13 = vpop.permute.xlu2 %524  ;;  %v516_v16 = vsel %vm306_vm0, %v852_v14, 0.0  ;;  %v520_v25 = vpack.c.bf16 %v852_v14, %v852_v14 }
 0x229   : > { %v530_v15 = vsel %vm344_vm1, %v525_v13, 0  ;;  %517 = vadd.xlane.f32.xlu2 %v516_v16 }
 0x22a   : > { %539 = vmatpush.bf16.msrb.mxu3 %v530_v15 }
 0x22b   : > { %v854_v17 = vpop.eup %853 }
 0x22c   : > { %v422_v18 = vsel %vm306_vm0, %v854_v17, 0.0  ;;  %v426_v19 = vpack.c.bf16 %v854_v17, %v854_v17  ;;  %v856_v20 = vpop.eup %855 }
 0x22d   : > { %423 = vadd.xlane.f32.xlu1 %v422_v18  ;;  %v614_v23 = vpack.c.bf16 %v856_v20, %v856_v20  ;;  %v610_v24 = vsel %vm306_vm0, %v856_v20, 0.0 }
 0x22e   : > { %803 = vmatmul.msk.bf16.vlgmr.msra.gmra.mxu3 %vm306_vm0, %v426_v19 }
 0x22f   : > { %v619_v21 = vpop.permute.xlu0 %618 }
 0x230   : > { %v624_v22 = vsel %vm344_vm1, %v619_v21, 0 }
 0x231   : > { %633 = vmatpush.bf16.msrb.mxu2 %v624_v22 }
 0x234   : > { %807 = vmatmul.msk.bf16.vlgmr.msrb.gmra.mxu2 %vm306_vm0, %v614_v23 }
 0x235   : > { %611 = vadd.xlane.f32.xlu1 %v610_v24 }
 0x23e   : > { %805 = vmatmul.msk.bf16.vlgmr.msrb.gmra.mxu3 %vm306_vm0, %v520_v25 }
 0x25a   : > { %v338_v26 = vpop.xlane.xlu0 %337 }
 0x25b   : > { %v339_v27 = vadd.f32 %v338_v26, %v335_v49 }
 0x25d   : > { %857 = vrcp.f32 %v339_v27  ;;  %v373_v31 = vand.u32 2147483648, %v339_v27  ;;  %v371_v33 = vand.u32 2147483647, %v339_v27  ;;  %vm367_vm3 = vweird.f32 %v339_v27 }
 0x25e   : > { %859 = vpow2.f32 %v416_v42 }
 0x25f   : > { %v374_v35 = vor.u32 1.1754944e-38, %v373_v31  ;;  %vm372_vm5 = vcmp.eq.f32.partialorder %v371_v33, 8.507059e+37  ;;  %861 = vpow2.f32 %v510_v43 }
 0x260   : > { %863 = vpow2.f32 %v604_v45 }
 0x263   : > { %v858_v28 = vpop.eup %857 }
 0x264   : > { %v363_v29 = vmul.f32 %v858_v28, %v339_v27  ;;  %vm368_vm2 = vweird.f32 %v858_v28  ;;  %v860_v46 = vpop.eup %859 }
 0x265   : > { %vm369_vm4 = vmor %vm367_vm3, %vm368_vm2  ;;  %v862_v47 = vpop.eup %861  ;;  %v421_v48 = vmul.f32 0.0, %v860_v46  ;;  %vm472_vm3 = vcmask 126016  }
 0x266   : > { %v364_v30 = vsub.f32 1.0, %v363_v29  ;;  %v864_v54 = vpop.eup %863 }
 0x267   : > { %v609_v55 = vmul.f32 0.0, %v864_v54 }
 0x268   : > { %v365_v32 = vmul.f32 %v858_v28, %v364_v30 }
 0x26a   : > { %v366_v34 = vadd.f32 %v858_v28, %v365_v32 }
 0x26c   : > { %v370_v36 = vsel %vm369_vm4, %v858_v28, %v366_v34  ;;  %vm566_vm4 = vcmask 191616  }
 0x26d   : > { %v375_v37 = vsel %vm372_vm5, %v374_v35, %v370_v36  ;;  %vm660_vm5 = vcmask 257216  }
 0x26e   : > { %v376_v38 = vmul.f32 %v375_v37, %v985_v51  ;;  %v1011_v51 = vmul.f32 0.0, %v862_v47 }
 0x270   : > { %v377_v39 = vpack.c.bf16 %v376_v38, %v376_v38 }
 0x272   : > { %379 = vst.msk [vmem:[%s1008_s7] sm:$0xf] %vm378_vm6, %v377_v39 }
 0x29c   : > { %v518_v49 = vpop.xlane.xlu2 %517 }
 0x29d   : > { %v1014_v53 = vadd.f32 %v518_v49, %v1011_v51 }
 0x29f   : > { %v557_v27 = vand.u32 2147483648, %v1014_v53  ;;  %vm551_vm0 = vweird.f32 %v1014_v53  ;;  %v555_v29 = vand.u32 2147483647, %v1014_v53 }
 0x2a0   : > { %v424_v50 = vpop.xlane.xlu1 %423 }
 0x2a1   : > { %v425_v52 = vadd.f32 %v424_v50, %v421_v48  ;;  %v558_v33 = vor.u32 1.1754944e-38, %v557_v27  ;;  %vm556_vm2 = vcmp.eq.f32.partialorder %v555_v29, 8.507059e+37 }
 0x2a3   : > { %865 = vrcp.f32 %v425_v52  ;;  %v463_v62 = vand.u32 2147483648, %v425_v52  ;;  %v461_v0 = vand.u32 2147483647, %v425_v52  ;;  %vm457_vm8 = vweird.f32 %v425_v52 }
 0x2a4   : > { %867 = vrcp.f32 %v1014_v53 }
 0x2a5   : > { %v464_v5 = vor.u32 1.1754944e-38, %v463_v62  ;;  %vm462_vm10 = vcmp.eq.f32.partialorder %v461_v0, 8.507059e+37 }
 0x2a8   : > { %v612_v56 = vpop.xlane.xlu1 %611 }
 0x2a9   : > { %v866_v57 = vpop.eup %865  ;;  %v613_v58 = vadd.f32 %v612_v56, %v609_v55 }
 0x2aa   : > { %v453_v59 = vmul.f32 %v866_v57, %v425_v52  ;;  %v868_v61 = vpop.eup %867  ;;  %vm458_vm7 = vweird.f32 %v866_v57 }
 0x2ab   : > { %869 = vrcp.f32 %v613_v58  ;;  %v547_v1 = vmul.f32 %v868_v61, %v1014_v53  ;;  %vm459_vm9 = vmor %vm457_vm8, %vm458_vm7  ;;  %v651_v13 = vand.u32 2147483648, %v613_v58  ;;  %v649_v16 = vand.u32 2147483647, %v613_v58 }
 0x2ac   : > { %v454_v60 = vsub.f32 1.0, %v453_v59  ;;  %vm645_vm12 = vweird.f32 %v613_v58  ;;  %vm552_vm15 = vweird.f32 %v868_v61 }
 0x2ad   : > { %v548_v10 = vsub.f32 1.0, %v547_v1  ;;  %v652_v20 = vor.u32 1.1754944e-38, %v651_v13  ;;  %vm650_vm14 = vcmp.eq.f32.partialorder %v649_v16, 8.507059e+37  ;;  %vm553_vm1 = vmor %vm551_vm0, %vm552_vm15 }
 0x2ae   : > { %v455_v63 = vmul.f32 %v866_v57, %v454_v60 }
 0x2af   : > { %v549_v19 = vmul.f32 %v868_v61, %v548_v10 }
 0x2b0   : > { %v456_v2 = vadd.f32 %v866_v57, %v455_v63 }
 0x2b1   : > { %v870_v3 = vpop.eup %869  ;;  %v447_v4 = vpop.f32.mrf.mxu3  ;;  %v550_v26 = vadd.f32 %v868_v61, %v549_v19 }
 0x2b2   : > { %v641_v6 = vmul.f32 %v870_v3, %v613_v58  ;;  %v451_v7 = vadd.f32 %v447_v4, %v421_v48  ;;  %v460_v8 = vsel %vm459_vm9, %v866_v57, %v456_v2  ;;  %vm646_vm11 = vweird.f32 %v870_v3 }
 0x2b3   : > { %v465_v9 = vsel %vm462_vm10, %v464_v5, %v460_v8  ;;  %vm647_vm13 = vmor %vm645_vm12, %vm646_vm11  ;;  %v554_v31 = vsel %vm553_vm1, %v868_v61, %v550_v26 }
 0x2b4   : > { %v642_v11 = vsub.f32 1.0, %v641_v6  ;;  %v466_v12 = vmul.f32 %v465_v9, %v451_v7  ;;  %v559_v35 = vsel %vm556_vm2, %v558_v33, %v554_v31 }
 0x2b6   : > { %v467_v14 = vpack.c.bf16 %v466_v12, %v466_v12  ;;  %v643_v15 = vmul.f32 %v870_v3, %v642_v11 }
 0x2b7   : > { %v635_v17 = vpop.f32.mrf.mxu2 }
 0x2b8   : > { %v644_v18 = vadd.f32 %v870_v3, %v643_v15  ;;  %469 = vrot.lane.b32.xlu1 %v467_v14, %s898_s8  ;;  %v639_v22 = vadd.f32 %v635_v17, %v609_v55 }
 0x2b9   : > { %v449_v21 = vpop.f32.mrf.mxu3 }
 0x2ba   : > { %v648_v23 = vsel %vm647_vm13, %v870_v3, %v644_v18 }
 0x2bb   : > { %v653_v24 = vsel %vm650_vm14, %v652_v20, %v648_v23 }
 0x2bc   : > { %v654_v25 = vmul.f32 %v653_v24, %v639_v22 }
 0x2be   : > { %v655_v28 = vpack.c.bf16 %v654_v25, %v654_v25 }
 0x2bf   : > { %v637_v30 = vpop.f32.mrf.mxu2 }
 0x2c0   : > { %657 = vrot.lane.b32.xlu2 %v655_v28, %s899_s9 }
 0x2c1   : > { %v541_v32 = vpop.f32.mrf.mxu3 }
 0x2c2   : > { %v545_v34 = vadd.f32 %v541_v32, %v1011_v51 }
 0x2c4   : > { %v560_v36 = vmul.f32 %v559_v35, %v545_v34 }
 0x2c6   : > { %v561_v37 = vpack.c.bf16 %v560_v36, %v560_v36 }
 0x2c8   : > { %563 = vrot.lane.b32.xlu1 %v561_v37, %s900_s10 }
 0x2c9   : > { %v543_v38 = vpop.f32.mrf.mxu3 }
 0x31a   : > { %v658_v41 = vpop.permute.xlu2 %657 }
 0x32a   : > { %v470_v39 = vpop.permute.xlu1 %469 }
 0x32b   : > { %473 = vst.msk [vmem:[%s1008_s7] sm:$0xf] %vm472_vm3, %v470_v39 }
 0x33a   : > { %v564_v40 = vpop.permute.xlu1 %563 }
 0x33b   : > { %567 = vst.msk [vmem:[%s1008_s7] sm:$0xf] %vm566_vm4, %v564_v40 }
 0x33c   : > { %661 = vst.msk [vmem:[%s1008_s7] sm:$0xf] %vm660_vm5, %v658_v41 }
 0x33d PF: > { %s13_s14 = sadd.s32 1, %s893_s14   ;;  %s1038_s12 = smov %s889_s13 }
 0x33e   : > { %p10_p5 = scmp.ge.s32.totalorder %s13_s14, 4   ;;  %s1039_s13 = smov %s1041_s15 }
 0x340   :  { %12 = sbr.rel (!%p10_p5) target bundleno = 2 (0x2), region = 68 }

// kernel: self_attention.3
= control target key start
LH: loop header
LB: loop body
LE: loop exit
PB: predicated region body
PF: predicated region fallthrough
CT: control target
= control target key end

     0   :  { %s532_s12 = smov 0   ;;  %s534_s13 = smov 0   ;;  %s589_s0 = inlined_call_operand.vmem [shape: bf16[2,8,32], index: 0, kind: input, shape index: {}]   ;;  %s590_s1 = inlined_call_operand.vmem [shape: bf16[3,32,32], index: 1, kind: input, shape index: {}]   ;;  %s591_s2 = inlined_call_operand.vmem [shape: f32[3,1,32], index: 2, kind: input, shape index: {}]   ;;  %s592_s3 = inlined_call_operand.vmem [shape: bf16[2,3,8,32], index: 3, kind: output, shape index: {}]  }
   0x1   :  { %s536_s14 = smov 0   ;;  %s538_s15 = smov 0  }
   0x2   :  { %s540_s16 = smov 0  }
   0x3 LB: > { %s25_s17 = sadd.s32 1, %s502_s14  ;;  %s32_s18 = sadd.s32 1, %s506_s15  ;;  %s510_s16 = sphi %s540_s16, %s13_s16   ;;  %s506_s15 = sphi %s538_s15, %s596_s15   ;;  %s502_s14 = sphi %s536_s14, %s595_s14   ;;  %s498_s13 = sphi %s534_s13, %s594_s13   ;;  %s494_s12 = sphi %s532_s12, %s593_s12  }
   0x4   : > { %p26_p0 = scmp.ge.s32.totalorder %s25_s17, 3  ;;  %p411_p1 = scmp.ge.s32.totalorder %s510_s16, 1 }
   0x5   : > { %p182_p2 = scmp.lt.s32.totalorder %s510_s16, 7 }
   0x6   : > { %s598_s17 = smov (%p26_p0, %s25_s17), 0  ;;  %s600_s18 = smov (!%p26_p0, %s32_s18), %s506_s15 }
   0x7   : > { %p183_p3 = pnand %p411_p1, %p182_p2  ;;  %p34_p4 = scmp.ge.s32.totalorder %s600_s18, 2 }
   0x8   : > { %p229_p5 = scmp.lt.s32.totalorder (!%p183_p3), %s494_s12, 2  ;;  %p222_p6 = scmp.lt.s32.totalorder (!%p183_p3), %s498_s13, 1 }
   0x9   : > { %s602_s18 = smov (%p34_p4, %s600_s18), 0  ;;  %186 = sbr.rel (%p183_p3) target bundleno = 159 (0x9f), region = 32 }
   0xe   : > { %s604_s12 = smov (!%p229_p5, %s494_s12), 2  ;;  %s606_s13 = smov (!%p222_p6, %s498_s13), 1  ;;  %vm270_vm0 = vcmask 261120   ;;  %vm288_vm1 = vcmask 257024  }
   0xf   : > { %s427_s19 = sshll.u32 %s604_s12, 4  ;;  %s236_s22 = scalar_lea.vmem %s591_s2, %s604_s12 }
  0x10   : > { %s233_s25 = scalar_lea.vmem %s590_s1, %s427_s19  ;;  %s412_s26 = sshll.u32 %s606_s13, 2  ;;  %v471_v3 = vld [vmem:[%s236_s22] ss:$0 sm:$0xff] }
  0x11   : > { %v429_v0 = vld [vmem:[%s233_s25 + $0x8] sm:$0xff]  ;;  %s430_s27 = smul.u32 3, %s606_s13  ;;  %v428_v1 = vld [vmem:[%s233_s25] sm:$0xff]  ;;  %s228_s4 = scalar_lea.vmem %s589_s0, %s412_s26 }
  0x12   : > { %280 = vmatpush.bf16.msra.mxu0 %v429_v0  ;;  %v249_v2 = vld [vmem:[%s228_s4] sm:$0xf] }
  0x13   : > { %s245_s28 = sadd.s32 %s430_s27, %s604_s12 }
  0x14   : > { %s415_s5 = sshll.u32 %s245_s28, 2 }
  0x15   : > { %s247_s8 = scalar_lea.vmem %s592_s3, %s415_s5 }
  0x16   : > { %281 = vmatpush.bf16.msra.mxu0 %v428_v1 }
  0x19   : > { %424 = vmatmul.msk.bf16.vlgmr.msra.gmra.mxu0 %vm270_vm0, %v249_v2 }
  0x96   : > { %v283_v4 = vpop.f32.mrf.mxu0 }
  0x97   : > { %v284_v5 = vadd.f32 %v471_v3, %v283_v4 }
  0x99   : > { %v287_v6 = vpack.c.bf16 %v284_v5, %v284_v5 }
  0x9b   : > { %289 = vst.msk [vmem:[%s247_s8] sm:$0xf] %vm288_vm1, %v287_v6 }
  0x9e   : > { %v285_v7 = vpop.f32.mrf.mxu0 }
  0x9f PF: > { %s13_s16 = sadd.s32 1, %s510_s16   ;;  %s593_s12 = smov %s502_s14 }
  0xa0   : > { %p10_p7 = scmp.ge.s32.totalorder %s13_s16, 8   ;;  %s594_s13 = smov %s506_s15 }
  0xa1   : > { %s595_s14 = smov %s598_s17  ;;  %s596_s15 = smov %s602_s18 }
  0xa2   :  { %12 = sbr.rel (!%p10_p7) target bundleno = 3 (0x3), region = 68 }

// kernel: self_attention.5
= control target key start
LH: loop header
LB: loop body
LE: loop exit
PB: predicated region body
PF: predicated region fallthrough
CT: control target
= control target key end

     0   :  { %8 = vsyncpa [#allocation3], 0  ;;  %s603_s0 = inlined_call_operand.vmem [shape: bf16[2,1,8,32], index: 0, kind: input, shape index: {}]   ;;  %s604_s1 = inlined_call_operand.vmem [shape: bf16[1,32,32], index: 1, kind: input, shape index: {}]   ;;  %s605_s2 = inlined_call_operand.vmem [shape: f32[1,32], index: 2, kind: input, shape index: {}]   ;;  %s606_s3 = inlined_call_operand.hbm [shape: f32[2,8,32], index: 3, kind: output, shape index: {}]  }
   0x1   :  { %10 = vsyncpa [#allocation3 + $0x1], 0  ;;  %s497_s12 = smov 0   ;;  %s499_s13 = smov 0  }
   0x2   :  { %s501_s14 = smov 0   ;;  %s503_s15 = smov 0  }
   0x3   :  { %s505_s16 = smov 0   ;;  %s507_s17 = smov 0  }
   0x4 LB: > { %s319_s18 = sadd.s32 4294967295, %s475_s17   ;;  %s320_s19 = sadd.s32 4294967294, %s475_s17   ;;  %s475_s17 = sphi %s507_s17, %s16_s17   ;;  %s471_s16 = sphi %s505_s16, %s613_s16   ;;  %s467_s15 = sphi %s503_s15, %s612_s15   ;;  %s463_s14 = sphi %s501_s14, %s611_s14   ;;  %s459_s13 = sphi %s499_s13, %s610_s13   ;;  %s455_s12 = sphi %s497_s12, %s609_s12  }
   0x5   : > { %s28_s20 = sadd.s32 1, %s471_s16  ;;  %s107_s21 = sadd.s32 1, %s463_s14 }
   0x6   : > { %p30_p0 = scmp.ge.s32.totalorder %s28_s20, 2  ;;  %p117_p1 = scmp.ne.s32.totalorder %s463_s14, %s459_s13 }
   0x7   : > { %p118_p2 = scmp.eq.s32.totalorder %s319_s18, 1  ;;  %p123_p3 = scmp.ne.s32.totalorder %s459_s13, %s455_s12 }
   0x8   : > { %s615_s20 = smov (%p30_p0, %s28_s20), 0  ;;  %p124_p5 = scmp.eq.s32.totalorder %s320_s19, 1 }
   0x9   : > { %p537_p4 = por %p118_p2, %p117_p1  ;;  %s102_s23 = ssub.s32 %s471_s16, %s615_s20 }
   0xa   : > { %p323_p6 = scmp.ge.s32.totalorder %s475_s17, 1  ;;  %p105_p7 = scmp.eq.s32.totalorder %s102_s23, 0 }
   0xb   : > { %p544_p8 = por %p124_p5, %p123_p3  ;;  %p158_p9 = scmp.lt.s32.totalorder %s475_s17, 3 }
   0xc   : > { %s550_s25 = scalar_select %p105_p7, %s463_s14, %s107_s21  }
   0xd   : > { %p159_p10 = pnand %p323_p6, %p158_p9 }
   0xe   : > { %p184_p11 = scmp.lt.s32.totalorder (!%p159_p10), %s467_s15, 1  ;;  %s181_s8 = sand.u32 (!%p159_p10), 1, %s459_s13  }
   0xf   : > { %162 = sbr.rel (%p159_p10) target bundleno = 162 (0xa2), region = 32  ;;  %s336_s9 = sshll.u32 (!%p159_p10), %s467_s15, 3 }
  0x10   : > { %s324_s10 = sshll.u32 (!%p159_p10), %s181_s8, 3  ;;  %s243_s19 = scalar_lea.hbm (!%p159_p10), %s606_s3, %s336_s9 }
  0x11   : > { %s183_s26 = scalar_lea.vmem (!%p159_p10), [#allocation2], %s324_s10  ;;  %s247_s28 = sshll.u32 (!%p159_p10), %s243_s19, 4  ;;  %s248_s28 = int_to_ptr.hbm [resolvable:$true] %s247_s28 }
  0x12   : > { %s245_s27 = sshll.u32 (!%p159_p10), %s183_s26, 4  ;;  %s232_s29 = scalar_lea.sflag (!%p159_p10), [#allocation3], %s181_s8  ;;  %s246_s27 = int_to_ptr.vmem [resolvable:$true] %s245_s27 }
  0x13   : > { %s417_s6 = scalar_lea.hbm (!%p159_p10), %s606_s3, 16 }
  0x14   : > { %v340_v0 = vld [vmem:[%s604_s1 + $0x8] sm:$0xff]  ;;  %v339_v1 = vld [vmem:[%s604_s1] sm:$0xff]  ;;  %s185_s30 = scalar_select %p184_p11, %s467_s15, 1  ;;  %vm213_vm0 = vcmask 261120  }
  0x15   : > { %223 = vmatpush.bf16.msra.mxu0 %v340_v0  ;;  %v396_v3 = vld [vmem:[%s605_s2] ss:$0 sm:$0xff]  ;;  %s411_s15 = sshra.s32 %s248_s28, 4  ;;  %s412_s15 = int_to_ptr.hbm [resolvable:$true] %s411_s15 }
  0x16   : > { %s325_s4 = sshll.u32 %s185_s30, 2  ;;  %s413_s30 = scalar_lea.hbm %s412_s15, 8 }
  0x17   : > { %s190_s7 = scalar_lea.vmem %s603_s0, %s325_s4  ;;  %p414_p12 = scmp.ne.s32.totalorder %s412_s15, %s413_s30 }
  0x18   : > { %v192_v2 = vld [vmem:[%s190_s7] sm:$0xf]  ;;  %p418_p1 = scmp.lt.s32.totalorder %s412_s15, %s606_s3  ;;  %p419_p2 = scmp.lt.s32.totalorder %s417_s6, %s413_s30 }
  0x19   : > { %224 = vmatpush.bf16.msra.mxu0 %v339_v1  ;;  %p415_p13 = pnand %p414_p12, %p537_p4 }
  0x1a   : > { %p420_p3 = por %p419_p2, %p418_p1 }
  0x1b   : > { %p416_p0 = pneg %p415_p13 }
  0x1c   : > { %334 = vmatmul.msk.bf16.vlgmr.msra.gmra.mxu0 %vm213_vm0, %v192_v2 }
  0x1d   : > { %p421_p5 = pnand %p420_p3, %p416_p0 }
  0x99   : > { %v226_v4 = vpop.f32.mrf.mxu0 }
  0x9a   : > { %v227_v5 = vadd.f32 %v396_v3, %v226_v4 }
  0x9c   : > { %230 = vst.msk [vmem:[%s183_s26] sm:$0xff] %vm213_vm0, %v227_v5 }
  0x9d   : > { %424 = shalt.err (!%p421_p5)
}
  0x9e   : > { %341 = dma.vmem_to_hbm [thread:$0]  (%p537_p4), %s246_s27, 128, %s248_s28, %s232_s29  }
  0xa1   : > { %v228_v6 = vpop.f32.mrf.mxu0 }
  0xa2 PF: > { %p347_p6 = scmp.ge.s32.totalorder %s475_s17, 2  ;;  %s259_s8 = sand.u32 1, %s455_s12  }
  0xa3   : > { %s260_s10 = scalar_lea.sflag [#allocation3], %s259_s8 }
  0xa4   : > { %p344_p7 = pnand %p347_p6, %p544_p8 }
  0xa6   : > { %p345_p9 = pneg %p344_p7 }
  0xa8   : > { %450 = dma.done.wait (%p345_p9), %s260_s10, 128  }
  0xa9   : > { %452 = vsyncadd (%p345_p9), %s260_s10, 4294967168  ;;  %s16_s17 = sadd.s32 1, %s475_s17   ;;  %s609_s12 = smov %s459_s13 }
  0xaa   : > { %p13_p10 = scmp.ge.s32.totalorder %s16_s17, 4   ;;  %s610_s13 = smov %s463_s14 }
  0xab   : > { %s611_s14 = smov %s550_s25  ;;  %s612_s15 = smov %s471_s16 }
  0xac   : > { %s613_s16 = smov %s615_s20  ;;  %15 = sbr.rel (!%p13_p10) target bundleno = 4 (0x4), region = 67 }
  0xb1   :  { %266 = vsyncpa [#allocation3], 1 }
  0xb2   :  { %268 = vsyncpa [#allocation3 + $0x1], 1 }

</bundles_post_ra>
